<compile_context>
chip_gen: v6e
topology: v6e:2x2x1
jax: 0.10.0
libtpu: 0.0.40
codegen_flags: <defaults>
</compile_context>

<pallas_src>
import jax
import jax.numpy as jnp
from jax.experimental import pallas as pl
from jax.experimental.pallas import tpu as pltpu

N_NODES = 16     # nodes per graph fed through f_q
F_IN = 16        # raw input feature dim consumed by f_q
F_FEAT = 256     # f_q output dim / MLP hidden dim (fixed by nn.Linear(256, 256))
LANE = 128       # lane width of the lane-dense output slab
BATCH = 8        # graphs per pallas_call in the demo (amortizes launch + weight DMA)

# Rows of the packed (8, 256) f32 bias slab (one DMA instead of four tiny ones).
_ROW_BF = 0      # f_q (frozen GCN) bias
_ROW_B1 = 1      # Linear(256, 256) bias
_ROW_B2 = 2      # Linear(256, 1) bias, replicated across lanes


def linear_paradigm_kernel(a_ref, x_ref, wf_ref, w1_ref, w2_ref, bias_ref, o_ref):
    # Static ref-view slices of the packed bias slab (zero runtime cost).
    bf = bias_ref[_ROW_BF:_ROW_BF + 1, :]        # (1, 256) f32
    b1 = bias_ref[_ROW_B1:_ROW_B1 + 1, :]        # (1, 256) f32
    b2 = bias_ref[_ROW_B2:_ROW_B2 + 1, :LANE]    # (1, 128) f32 (b2 replicated)

    # ---- frozen f_q(x, A): GCN-style feature extractor -> (N, 256) ----
    # Activations stay f32 end-to-end; only the big weight matrices arrive as
    # bf16 (halved HBM->VMEM bytes) and are upcast on the fly.  f32 accumulation.
    ax = jnp.dot(a_ref[...], x_ref[...], preferred_element_type=jnp.float32)
    feat = jnp.dot(ax, wf_ref[...].astype(jnp.float32),
                   preferred_element_type=jnp.float32) + bf
    feat = jnp.maximum(feat, 0.0)

    # ---- trainable MLP head: Linear(256,256) -> ReLU -> Linear(256,1) ----
    h = jnp.dot(feat, w1_ref[...].astype(jnp.float32),
                preferred_element_type=jnp.float32) + b1
    h = jnp.maximum(h, 0.0)

    # Final Linear(256, 1) on the otherwise-idle MXU: w2 is pre-padded to
    # (256, 128) with the weight vector in column 0, so this dot emits the
    # lane-dense (N, 128) slab directly (no XLU reduction, no broadcast_to).
    # The wrapper slices column 0 back out.
    o_ref[...] = jnp.dot(h, w2_ref[...].astype(jnp.float32),
                         preferred_element_type=jnp.float32) + b2


@jax.jit
def linear_paradigm_forward(x, a, wf, bf, w1, b1, w2_row, b2):
    """x: (B, N, F_IN) node features for B graphs sharing adjacency a: (N, N)."""
    bsz, n, f_in = x.shape
    assert a.shape == (n, n)

    # bf16 only where it pays: the big weight matrices (halves their DMA bytes).
    wf_lp = wf.astype(jnp.bfloat16)
    w1_lp = w1.astype(jnp.bfloat16)
    # Pad the (1, 256) w2 row into a (256, 128) matrix, weight vector in column 0.
    w2_pad = jnp.zeros((F_FEAT, LANE), jnp.bfloat16).at[:, 0].set(
        w2_row[0].astype(jnp.bfloat16))
    # Pack the tiny f32 operands into one (8, 256) slab -> single DMA / buffer.
    slab = jnp.zeros((8, F_FEAT), jnp.float32)
    slab = slab.at[_ROW_BF].set(bf[0])
    slab = slab.at[_ROW_B1].set(b1[0])
    slab = slab.at[_ROW_B2].set(jnp.full((F_FEAT,), b2[0, 0], jnp.float32))

    out_padded = pl.pallas_call(
        linear_paradigm_kernel,
        out_shape=jax.ShapeDtypeStruct((bsz, n, LANE), jnp.float32),
        grid_spec=pltpu.PrefetchScalarGridSpec(
            num_scalar_prefetch=0,
            grid=(bsz,),  # one graph per step; weight blocks stay VMEM-resident
            in_specs=[
                pl.BlockSpec((n, n), lambda b: (0, 0)),               # A   (f32, shared)
                pl.BlockSpec((None, n, f_in), lambda b: (b, 0, 0)),   # x   (f32, per-step)
                pl.BlockSpec((f_in, F_FEAT), lambda b: (0, 0)),       # Wf  (bf16, resident)
                pl.BlockSpec((F_FEAT, F_FEAT), lambda b: (0, 0)),     # W1  (bf16, resident)
                pl.BlockSpec((F_FEAT, LANE), lambda b: (0, 0)),       # w2 padded (bf16)
                pl.BlockSpec((8, F_FEAT), lambda b: (0, 0)),          # packed bias slab (f32)
            ],
            out_specs=pl.BlockSpec((None, n, LANE), lambda b: (b, 0, 0)),
        ),
        compiler_params=pltpu.CompilerParams(
            dimension_semantics=("parallel",)),
    )(a, x, wf_lp, w1_lp, w2_pad, slab)

    # Slice the lane-dense slab back to the module's (..., 1) output.
    return out_padded[:, :, :1]


def _init_params(key):
    ks = jax.random.split(key, 6)
    # frozen f_q stand-in
    wf = jax.random.normal(ks[0], (F_IN, F_FEAT), jnp.float32) * (1.0 / jnp.sqrt(F_IN))
    bf = jax.random.normal(ks[1], (1, F_FEAT), jnp.float32) * 0.01
    # MLP head: W1 pre-transposed (in, out); w2 kept as torch-native (1, 256) row
    w1 = jax.random.normal(ks[2], (F_FEAT, F_FEAT), jnp.float32) * (1.0 / jnp.sqrt(F_FEAT))
    b1 = jax.random.normal(ks[3], (1, F_FEAT), jnp.float32) * 0.01
    w2_row = jax.random.normal(ks[4], (1, F_FEAT), jnp.float32) * (1.0 / jnp.sqrt(F_FEAT))
    b2 = jax.random.normal(ks[5], (1, 1), jnp.float32) * 0.01
    return wf, bf, w1, b1, w2_row, b2


def _reference(x, a, wf, bf, w1, b1, w2_row, b2):
    # f32 math everywhere; the big weights are rounded through bf16 exactly as
    # the kernel stores them (so only matmul-internal precision can differ).
    wf_q = wf.astype(jnp.bfloat16).astype(jnp.float32)
    w1_q = w1.astype(jnp.bfloat16).astype(jnp.float32)
    w2_q = w2_row.astype(jnp.bfloat16).astype(jnp.float32)
    ax = jnp.matmul(a, x)                                   # (B, N, F_IN)
    feat = jnp.maximum(jnp.matmul(ax, wf_q) + bf, 0.0)      # (B, N, 256)
    h = jnp.maximum(jnp.matmul(feat, w1_q) + b1, 0.0)       # (B, N, 256)
    return jnp.sum(h * w2_q, axis=-1, keepdims=True) + b2   # (B, N, 1)


if __name__ == "__main__":
    key = jax.random.PRNGKey(0)
    kx, ka, kp = jax.random.split(key, 3)

    x = jax.random.normal(kx, (BATCH, N_NODES, F_IN), jnp.float32)
    # symmetric, row-normalized-ish shared adjacency
    a_raw = jax.random.uniform(ka, (N_NODES, N_NODES), jnp.float32)
    a = (a_raw + a_raw.T) * 0.5 / N_NODES

    wf, bf, w1, b1, w2_row, b2 = _init_params(kp)

    out = linear_paradigm_forward(x, a, wf, bf, w1, b1, w2_row, b2)
    out = jax.block_until_ready(out)

    ref = _reference(x, a, wf, bf, w1, b1, w2_row, b2)
    assert out.shape == (BATCH, N_NODES, 1)
    assert jnp.allclose(out, ref, atol=5e-3, rtol=5e-3), float(
        jnp.max(jnp.abs(out - ref)))

    print("KERNEL_OK")
</pallas_src>

<mosaic_0001>
module attributes {stable_mosaic.version = 11 : i64} {
  func.func @linear_paradigm_kernel(%arg0: i32, %arg1: memref<16x16xf32, #tpu.memory_space<vmem>>, %arg2: memref<1x16x16xf32, #tpu.memory_space<vmem>>, %arg3: memref<16x256xbf16, #tpu.memory_space<vmem>>, %arg4: memref<256x256xbf16, #tpu.memory_space<vmem>>, %arg5: memref<256x128xbf16, #tpu.memory_space<vmem>>, %arg6: memref<8x256xf32, #tpu.memory_space<vmem>>, %arg7: memref<1x16x128xf32, #tpu.memory_space<vmem>>) attributes {dimension_semantics = [#tpu.dimension_semantics<parallel>], iteration_bounds = array<i64: 8>, scalar_prefetch = 0 : i64, scratch_operands = 0 : i64, tpu.core_type = #tpu.core_type<tc>, window_params = [{pipeline_mode = #tpu.pipeline_mode<synchronous>, transform_indices = @transform_0, window_bounds = array<i64: 16, 16>}, {transform_indices = @transform_1, window_bounds = array<i64: 1, 16, 16>}, {pipeline_mode = #tpu.pipeline_mode<synchronous>, transform_indices = @transform_2, window_bounds = array<i64: 16, 256>}, {pipeline_mode = #tpu.pipeline_mode<synchronous>, transform_indices = @transform_3, window_bounds = array<i64: 256, 256>}, {pipeline_mode = #tpu.pipeline_mode<synchronous>, transform_indices = @transform_4, window_bounds = array<i64: 256, 128>}, {pipeline_mode = #tpu.pipeline_mode<synchronous>, transform_indices = @transform_5, window_bounds = array<i64: 8, 256>}, {transform_indices = @transform_6, window_bounds = array<i64: 1, 16, 128>}]} {
    %c0 = arith.constant 0 : index
    %c0_0 = arith.constant 0 : index
    %0 = vector.load %arg6[%c0, %c0_0] : memref<8x256xf32, #tpu.memory_space<vmem>>, vector<1x256xf32>
    %c1 = arith.constant 1 : index
    %c0_1 = arith.constant 0 : index
    %1 = vector.load %arg6[%c1, %c0_1] : memref<8x256xf32, #tpu.memory_space<vmem>>, vector<1x256xf32>
    %c2 = arith.constant 2 : index
    %c0_2 = arith.constant 0 : index
    %2 = vector.load %arg6[%c2, %c0_2] : memref<8x256xf32, #tpu.memory_space<vmem>>, vector<1x128xf32>
    %c0_3 = arith.constant 0 : index
    %c0_4 = arith.constant 0 : index
    %3 = vector.load %arg1[%c0_3, %c0_4] : memref<16x16xf32, #tpu.memory_space<vmem>>, vector<16x16xf32>
    %c0_5 = arith.constant 0 : index
    %c0_6 = arith.constant 0 : index
    %c0_7 = arith.constant 0 : index
    %4 = vector.load %arg2[%c0_5, %c0_6, %c0_7] : memref<1x16x16xf32, #tpu.memory_space<vmem>>, vector<1x16x16xf32>
    %5 = vector.shape_cast %4 : vector<1x16x16xf32> to vector<16x16xf32>
    %cst = arith.constant dense<0.000000e+00> : vector<16x16xf32>
    %6 = tpu.matmul %3, %5, %cst {dimension_numbers = #tpu.dot_dimension_numbers<[1], [0], [0], [1], [0, 0, 1, 1], [], []>} : vector<16x16xf32>, vector<16x16xf32>, vector<16x16xf32> -> vector<16x16xf32>
    %c0_8 = arith.constant 0 : index
    %c0_9 = arith.constant 0 : index
    %7 = vector.load %arg3[%c0_8, %c0_9] : memref<16x256xbf16, #tpu.memory_space<vmem>>, vector<16x256xbf16>
    %8 = arith.extf %7 : vector<16x256xbf16> to vector<16x256xf32>
    %cst_10 = arith.constant dense<0.000000e+00> : vector<16x256xf32>
    %9 = tpu.matmul %6, %8, %cst_10 {dimension_numbers = #tpu.dot_dimension_numbers<[1], [0], [0], [1], [0, 0, 1, 1], [], []>} : vector<16x16xf32>, vector<16x256xf32>, vector<16x256xf32> -> vector<16x256xf32>
    %10 = vector.broadcast %0 : vector<1x256xf32> to vector<16x256xf32>
    %11 = arith.addf %9, %10 : vector<16x256xf32>
    %cst_11 = arith.constant 0.000000e+00 : f32
    %12 = vector.broadcast %cst_11 : f32 to vector<16x256xf32>
    %13 = arith.maximumf %11, %12 : vector<16x256xf32>
    %c0_12 = arith.constant 0 : index
    %c0_13 = arith.constant 0 : index
    %14 = vector.load %arg4[%c0_12, %c0_13] : memref<256x256xbf16, #tpu.memory_space<vmem>>, vector<256x256xbf16>
    %15 = arith.extf %14 : vector<256x256xbf16> to vector<256x256xf32>
    %cst_14 = arith.constant dense<0.000000e+00> : vector<16x256xf32>
    %16 = tpu.matmul %13, %15, %cst_14 {dimension_numbers = #tpu.dot_dimension_numbers<[1], [0], [0], [1], [0, 0, 1, 1], [], []>} : vector<16x256xf32>, vector<256x256xf32>, vector<16x256xf32> -> vector<16x256xf32>
    %17 = vector.broadcast %1 : vector<1x256xf32> to vector<16x256xf32>
    %18 = arith.addf %16, %17 : vector<16x256xf32>
    %cst_15 = arith.constant 0.000000e+00 : f32
    %19 = vector.broadcast %cst_15 : f32 to vector<16x256xf32>
    %20 = arith.maximumf %18, %19 : vector<16x256xf32>
    %c0_16 = arith.constant 0 : index
    %c0_17 = arith.constant 0 : index
    %21 = vector.load %arg5[%c0_16, %c0_17] : memref<256x128xbf16, #tpu.memory_space<vmem>>, vector<256x128xbf16>
    %22 = arith.extf %21 : vector<256x128xbf16> to vector<256x128xf32>
    %cst_18 = arith.constant dense<0.000000e+00> : vector<16x128xf32>
    %23 = tpu.matmul %20, %22, %cst_18 {dimension_numbers = #tpu.dot_dimension_numbers<[1], [0], [0], [1], [0, 0, 1, 1], [], []>} : vector<16x256xf32>, vector<256x128xf32>, vector<16x128xf32> -> vector<16x128xf32>
    %24 = vector.broadcast %2 : vector<1x128xf32> to vector<16x128xf32>
    %25 = arith.addf %23, %24 : vector<16x128xf32>
    %c0_19 = arith.constant 0 : index
    %c0_20 = arith.constant 0 : index
    %c0_21 = arith.constant 0 : index
    %26 = vector.load %arg7[%c0_19, %c0_20, %c0_21] : memref<1x16x128xf32, #tpu.memory_space<vmem>>, vector<1x16x128xf32>
    %27 = vector.shape_cast %26 : vector<1x16x128xf32> to vector<16x128xf32>
    %28 = vector.shape_cast %25 : vector<16x128xf32> to vector<1x16x128xf32>
    tpu.vector_store %arg7[%c0_19, %c0_20, %c0_21], %28 {strides = array<i32>} : memref<1x16x128xf32, #tpu.memory_space<vmem>>, vector<1x16x128xf32>,
    return
  }
  func.func @transform_0(%arg0: i32) -> (i32, i32) {
    %c0_i32 = arith.constant 0 : i32
    %c0_i32_0 = arith.constant 0 : i32
    %c0_i32_1 = arith.constant 0 : i32
    return %c0_i32, %c0_i32_0 : i32, i32
  }
  func.func @transform_1(%arg0: i32) -> (i32, i32, i32) {
    %c0_i32 = arith.constant 0 : i32
    %c0_i32_0 = arith.constant 0 : i32
    %c0_i32_1 = arith.constant 0 : i32
    return %arg0, %c0_i32, %c0_i32_0 : i32, i32, i32
  }
  func.func @transform_2(%arg0: i32) -> (i32, i32) {
    %c0_i32 = arith.constant 0 : i32
    %c0_i32_0 = arith.constant 0 : i32
    %c0_i32_1 = arith.constant 0 : i32
    return %c0_i32, %c0_i32_0 : i32, i32
  }
  func.func @transform_3(%arg0: i32) -> (i32, i32) {
    %c0_i32 = arith.constant 0 : i32
    %c0_i32_0 = arith.constant 0 : i32
    %c0_i32_1 = arith.constant 0 : i32
    return %c0_i32, %c0_i32_0 : i32, i32
  }
  func.func @transform_4(%arg0: i32) -> (i32, i32) {
    %c0_i32 = arith.constant 0 : i32
    %c0_i32_0 = arith.constant 0 : i32
    %c0_i32_1 = arith.constant 0 : i32
    return %c0_i32, %c0_i32_0 : i32, i32
  }
  func.func @transform_5(%arg0: i32) -> (i32, i32) {
    %c0_i32 = arith.constant 0 : i32
    %c0_i32_0 = arith.constant 0 : i32
    %c0_i32_1 = arith.constant 0 : i32
    return %c0_i32, %c0_i32_0 : i32, i32
  }
  func.func @transform_6(%arg0: i32) -> (i32, i32, i32) {
    %c0_i32 = arith.constant 0 : i32
    %c0_i32_0 = arith.constant 0 : i32
    %c0_i32_1 = arith.constant 0 : i32
    return %arg0, %c0_i32, %c0_i32_0 : i32, i32, i32
  }
}

</mosaic_0001>

<bundles_post_ra>
// kernel: linear_paradigm_forward.1
= control target key start
LH: loop header
LB: loop body
LE: loop exit
PB: predicated region body
PF: predicated region fallthrough
CT: control target
= control target key end

     0   :  { %s1029_s21 = smov 0   ;;  %s1224_s0 = inlined_call_operand.vmem [shape: f32[16,16], index: 0, kind: input, shape index: {}]   ;;  %s1225_s1 = inlined_call_operand.vmem [shape: f32[8,16,16], index: 1, kind: input, shape index: {}]   ;;  %s1226_s2 = inlined_call_operand.vmem [shape: bf16[16,256], index: 2, kind: input, shape index: {}]   ;;  %s1227_s3 = inlined_call_operand.vmem [shape: bf16[256,256], index: 3, kind: input, shape index: {}]   ;;  %s1228_s4 = inlined_call_operand.vmem [shape: bf16[256,128], index: 4, kind: input, shape index: {}]   ;;  %s1229_s5 = inlined_call_operand.vmem [shape: f32[8,256], index: 5, kind: input, shape index: {}]   ;;  %s1230_s6 = inlined_call_operand.vmem [shape: f32[8,16,128], index: 6, kind: output, shape index: {}]  }
   0x1 LB: > { %s830_s22 = sadd.s32 4294967295, %s991_s21   ;;  %p834_p0 = scmp.ge.s32.totalorder %s991_s21, 1  ;;  %s991_s21 = sphi %s1029_s21, %s16_s21  }
   0x2   : > { %p212_p1 = scmp.lt.s32.totalorder %s991_s21, 9 }
   0x4   : > { %p213_p2 = pnand %p834_p0, %p212_p1 }
   0x5   : > { %p242_p3 = scmp.lt.s32.totalorder (!%p213_p2), %s830_s22, 7 }
   0x6   : > { %216 = sbr.rel (%p213_p2) target bundleno = 818 (0x332), region = 44 }
   0xb   : > { %v256_v0 = vld [vmem:[%s1224_s0] sm:$0xff]  ;;  %vm260_vm0 = vcmask 130048   ;;  %s1232_s22 = smov (!%p242_p3, %s830_s22), 7  ;;  %v343_v1 = vld [vmem:[%s1226_s2 + $0x8] sm:$0xff]  ;;  %v993_v10 = vmov 0.0   ;;  %v461_v11 = vld [vmem:[%s1227_s3 + $0x78] sm:$0xff] }
   0xc   : > { %973 = vmatprep.mubr.msk.f32.mxu1 %vm260_vm0, %v256_v0  ;;  %s846_s25 = sshll.u32 %s1232_s22, 4  ;;  %v347_v4 = vunpack.c.h.bf16 %v343_v1  ;;  %v257_v5 = vld [vmem:[%s1224_s0 + $0x8] sm:$0xff]  ;;  %v346_v6 = vunpack.c.l.bf16 %v343_v1  ;;  %v342_v7 = vld [vmem:[%s1226_s2] sm:$0xff]  ;;  %v460_v12 = vld [vmem:[%s1227_s3 + $0x70] sm:$0xff]  ;;  %v509_v14 = vunpack.c.h.bf16 %v461_v11  ;;  %v508_v15 = vunpack.c.l.bf16 %v461_v11 }
   0xd   : > { %s246_s30 = scalar_lea.vmem %s1225_s1, %s846_s25  ;;  %v345_v8 = vunpack.c.h.bf16 %v342_v7  ;;  %v344_v9 = vunpack.c.l.bf16 %v342_v7  ;;  %v459_v13 = vld [vmem:[%s1227_s3 + $0x68] sm:$0xff]  ;;  %v507_v16 = vunpack.c.h.bf16 %v460_v12  ;;  %v506_v17 = vunpack.c.l.bf16 %v460_v12  ;;  %v458_v18 = vld [vmem:[%s1227_s3 + $0x60] sm:$0xff]  ;;  %v457_v21 = vld [vmem:[%s1227_s3 + $0x58] sm:$0xff]  ;;  %s251_s10 = scalar_lea.vmem %s1230_s6, %s846_s25 }
   0xe   : > { %v259_v2 = vld [vmem:[%s246_s30 + $0x8] sm:$0xff]  ;;  %v258_v3 = vld [vmem:[%s246_s30] sm:$0xff]  ;;  %553 = vmatprep.subr.mxu0 %v509_v14  ;;  %v505_v19 = vunpack.c.h.bf16 %v459_v13  ;;  %v504_v20 = vunpack.c.l.bf16 %v459_v13  ;;  %v503_v22 = vunpack.c.h.bf16 %v458_v18  ;;  %v502_v23 = vunpack.c.l.bf16 %v458_v18  ;;  %v456_v24 = vld [vmem:[%s1227_s3 + $0x50] sm:$0xff] }
   0xf   : > { %969 = vmatprep.subr.mxu1 %v259_v2  ;;  %554 = vmatpush1.msra.mxu0 %v508_v15  ;;  %v501_v25 = vunpack.c.h.bf16 %v457_v21  ;;  %v500_v26 = vunpack.c.l.bf16 %v457_v21  ;;  %v455_v27 = vld [vmem:[%s1227_s3 + $0x48] sm:$0xff]  ;;  %v499_v28 = vunpack.c.h.bf16 %v456_v24  ;;  %v498_v29 = vunpack.c.l.bf16 %v456_v24  ;;  %v454_v30 = vld [vmem:[%s1227_s3 + $0x40] sm:$0xff]  ;;  %v453_v33 = vld [vmem:[%s1227_s3 + $0x38] sm:$0xff] }
  0x10   : > { %970 = vmatpush3.msra.mxu1 %v259_v2  ;;  %555 = vmatprep.subr.mxu0 %v507_v16  ;;  %v497_v31 = vunpack.c.h.bf16 %v455_v27  ;;  %v496_v32 = vunpack.c.l.bf16 %v455_v27  ;;  %v495_v34 = vunpack.c.h.bf16 %v454_v30  ;;  %v494_v35 = vunpack.c.l.bf16 %v454_v30  ;;  %v452_v36 = vld [vmem:[%s1227_s3 + $0x30] sm:$0xff]  ;;  %v451_v39 = vld [vmem:[%s1227_s3 + $0x28] sm:$0xff]  ;;  %v450_v42 = vld [vmem:[%s1227_s3 + $0x20] sm:$0xff] }
  0x11   : > { %971 = vmatprep.subr.mxu1 %v258_v3  ;;  %556 = vmatpush1.msra.mxu0 %v506_v17  ;;  %v493_v37 = vunpack.c.h.bf16 %v453_v33  ;;  %v492_v38 = vunpack.c.l.bf16 %v453_v33  ;;  %v491_v40 = vunpack.c.h.bf16 %v452_v36  ;;  %v490_v41 = vunpack.c.l.bf16 %v452_v36  ;;  %v449_v45 = vld [vmem:[%s1227_s3 + $0x18] sm:$0xff]  ;;  %v448_v48 = vld [vmem:[%s1227_s3 + $0x10] sm:$0xff]  ;;  %v447_v51 = vld [vmem:[%s1227_s3 + $0x8] sm:$0xff] }
  0x12   : > { %972 = vmatpush3.msra.mxu1 %v258_v3  ;;  %557 = vmatprep.subr.mxu0 %v505_v19  ;;  %v489_v43 = vunpack.c.h.bf16 %v451_v39  ;;  %v488_v44 = vunpack.c.l.bf16 %v451_v39  ;;  %v487_v46 = vunpack.c.h.bf16 %v450_v42  ;;  %v486_v47 = vunpack.c.l.bf16 %v450_v42  ;;  %v446_v54 = vld [vmem:[%s1227_s3] sm:$0xff]  ;;  %v477_v57 = vld [vmem:[%s1227_s3 + $0xf8] sm:$0xff]  ;;  %v476_v60 = vld [vmem:[%s1227_s3 + $0xf0] sm:$0xff] }
  0x13   : > { %974 = vmatmul.mubr.msk.f32.vlgmr.msra.gmra.mxu1 %vm260_vm0, %v257_v5  ;;  %393 = vmatprep.subr.mxu1 %v347_v4  ;;  %v485_v49 = vunpack.c.h.bf16 %v449_v45  ;;  %v484_v50 = vunpack.c.l.bf16 %v449_v45  ;;  %v483_v52 = vunpack.c.h.bf16 %v448_v48  ;;  %v482_v53 = vunpack.c.l.bf16 %v448_v48  ;;  %v475_v63 = vld [vmem:[%s1227_s3 + $0xe8] sm:$0xff]  ;;  %v474_v2 = vld [vmem:[%s1227_s3 + $0xe0] sm:$0xff]  ;;  %v473_v5 = vld [vmem:[%s1227_s3 + $0xd8] sm:$0xff] }
  0x14   : > { %394 = vmatpush1.msra.mxu1 %v346_v6  ;;  %429 = vmatprep.mubr.f32.mxu1 %v993_v10  ;;  %v481_v55 = vunpack.c.h.bf16 %v447_v51  ;;  %v480_v56 = vunpack.c.l.bf16 %v447_v51  ;;  %v479_v58 = vunpack.c.h.bf16 %v446_v54  ;;  %v478_v59 = vunpack.c.l.bf16 %v446_v54  ;;  %v471_v12 = vld [vmem:[%s1227_s3 + $0xc8] sm:$0xff]  ;;  %v470_v15 = vld [vmem:[%s1227_s3 + $0xc0] sm:$0xff]  ;;  %v469_v18 = vld [vmem:[%s1227_s3 + $0xb8] sm:$0xff] }
  0x15   : > { %395 = vmatprep.subr.mxu1 %v345_v8  ;;  %558 = vmatpush1.msra.mxu0 %v504_v20  ;;  %v541_v61 = vunpack.c.h.bf16 %v477_v57  ;;  %v540_v62 = vunpack.c.l.bf16 %v477_v57  ;;  %v539_v0 = vunpack.c.h.bf16 %v476_v60  ;;  %v538_v1 = vunpack.c.l.bf16 %v476_v60  ;;  %v472_v8 = vld [vmem:[%s1227_s3 + $0xd0] sm:$0xff]  ;;  %v467_v24 = vld [vmem:[%s1227_s3 + $0xa8] sm:$0xff]  ;;  %v466_v27 = vld [vmem:[%s1227_s3 + $0xa0] sm:$0xff] }
  0x16   : > { %396 = vmatpush1.msra.mxu1 %v344_v9  ;;  %559 = vmatprep.subr.mxu0 %v503_v22  ;;  %v537_v3 = vunpack.c.h.bf16 %v475_v63  ;;  %v536_v4 = vunpack.c.l.bf16 %v475_v63  ;;  %v535_v6 = vunpack.c.h.bf16 %v474_v2  ;;  %v534_v7 = vunpack.c.l.bf16 %v474_v2  ;;  %v468_v21 = vld [vmem:[%s1227_s3 + $0xb0] sm:$0xff]  ;;  %v462_v42 = vld [vmem:[%s1227_s3 + $0x80] sm:$0xff]  ;;  %v926_v45 = vld [vmem:[%s1228_s4 + $0x78] sm:$0xff]  }
  0x17   : > { %560 = vmatpush1.msra.mxu0 %v502_v23  ;;  %v533_v9 = vunpack.c.h.bf16 %v473_v5  ;;  %v532_v11 = vunpack.c.l.bf16 %v473_v5  ;;  %v531_v13 = vunpack.c.h.bf16 %v472_v8  ;;  %v530_v14 = vunpack.c.l.bf16 %v472_v8  ;;  %v917_v51 = vld [vmem:[%s1228_s4 + $0x30] sm:$0xff]   ;;  %v916_v57 = vld [vmem:[%s1228_s4 + $0x28] sm:$0xff]   ;;  %v915_v63 = vld [vmem:[%s1228_s4 + $0x20] sm:$0xff]  }
  0x18   : > { %561 = vmatprep.subr.mxu0 %v501_v25  ;;  %v529_v16 = vunpack.c.h.bf16 %v471_v12  ;;  %v528_v17 = vunpack.c.l.bf16 %v471_v12  ;;  %v527_v19 = vunpack.c.h.bf16 %v470_v15  ;;  %v526_v20 = vunpack.c.l.bf16 %v470_v15  ;;  %v914_v5 = vld [vmem:[%s1228_s4 + $0x18] sm:$0xff]   ;;  %v913_v12 = vld [vmem:[%s1228_s4 + $0x10] sm:$0xff]  }
  0x19   : > { %562 = vmatpush1.msra.mxu0 %v500_v26  ;;  %v525_v22 = vunpack.c.h.bf16 %v469_v18  ;;  %v524_v23 = vunpack.c.l.bf16 %v469_v18  ;;  %v523_v25 = vunpack.c.h.bf16 %v468_v21  ;;  %v522_v26 = vunpack.c.l.bf16 %v468_v21  ;;  %v252_v21 = vld [vmem:[%s1229_s5] ss:$8 sm:$0x3] }
  0x1a   : > { %563 = vmatprep.subr.mxu0 %v499_v28  ;;  %v521_v28 = vunpack.c.h.bf16 %v467_v24  ;;  %v519_v30 = vunpack.c.h.bf16 %v466_v27  ;;  %v911_v48 = vunpack.c.h.bf16 %v926_v45  ;;  %v875_v54 = vunpack.c.h.bf16 %v917_v51 }
  0x1b   : > { %564 = vmatpush1.msra.mxu0 %v498_v29  ;;  %v520_v29 = vunpack.c.l.bf16 %v467_v24  ;;  %v871_v60 = vunpack.c.h.bf16 %v916_v57  ;;  %v867_v2 = vunpack.c.h.bf16 %v915_v63  ;;  %v863_v8 = vunpack.c.h.bf16 %v914_v5 }
  0x1c   : > { %565 = vmatprep.subr.mxu0 %v497_v31  ;;  %v518_v31 = vunpack.c.l.bf16 %v466_v27  ;;  %931 = vmatprep.subr.mxu1 %v911_v48  ;;  %v859_v15 = vunpack.c.h.bf16 %v913_v12  ;;  %v349_v18 = vlaneseq  ;;  %v839_v48 = vld [vmem:[%s1229_s5 + $0x1] ss:$8 sm:$0x3] }
  0x1d   : > { %566 = vmatpush1.msra.mxu0 %v496_v32 }
  0x1e   : > { %567 = vmatprep.subr.mxu0 %v495_v34  ;;  %v465_v34 = vld [vmem:[%s1227_s3 + $0x98] sm:$0xff] }
  0x1f   : > { %568 = vmatpush1.msra.mxu0 %v494_v35  ;;  %v517_v35 = vunpack.c.h.bf16 %v465_v34  ;;  %v516_v36 = vunpack.c.l.bf16 %v465_v34 }
  0x20   : > { %569 = vmatprep.subr.mxu0 %v493_v37  ;;  %v464_v37 = vld [vmem:[%s1227_s3 + $0x90] sm:$0xff] }
  0x21   : > { %570 = vmatpush1.msra.mxu0 %v492_v38  ;;  %v515_v38 = vunpack.c.h.bf16 %v464_v37  ;;  %v514_v39 = vunpack.c.l.bf16 %v464_v37  ;;  %v920_v37 = vld [vmem:[%s1228_s4 + $0x48] sm:$0xff]  }
  0x22   : > { %571 = vmatprep.subr.mxu0 %v491_v40 }
  0x23   : > { %572 = vmatpush1.msra.mxu0 %v490_v41 }
  0x24   : > { %573 = vmatprep.subr.mxu0 %v489_v43  ;;  %v511_v43 = vunpack.c.h.bf16 %v462_v42 }
  0x25   : > { %574 = vmatpush1.msra.mxu0 %v488_v44  ;;  %v510_v44 = vunpack.c.l.bf16 %v462_v42  ;;  %v919_v42 = vld [vmem:[%s1228_s4 + $0x40] sm:$0xff]  }
  0x26   : > { %575 = vmatprep.subr.mxu0 %v487_v46  ;;  %v918_v46 = vld [vmem:[%s1228_s4 + $0x38] sm:$0xff]  }
  0x27   : > { %576 = vmatpush1.msra.mxu0 %v486_v47  ;;  %v925_v47 = vld [vmem:[%s1228_s4 + $0x70] sm:$0xff]  }
  0x28   : > { %577 = vmatprep.subr.mxu0 %v485_v49  ;;  %v879_v49 = vunpack.c.h.bf16 %v918_v46 }
  0x29   : > { %578 = vmatpush1.msra.mxu0 %v484_v50  ;;  %v910_v50 = vunpack.c.l.bf16 %v926_v45 }
  0x2a   : > { %579 = vmatprep.subr.mxu0 %v483_v52  ;;  %v878_v52 = vunpack.c.l.bf16 %v918_v46  ;;  %v882_v46 = vunpack.c.l.bf16 %v919_v42 }
  0x2b   : > { %580 = vmatpush1.msra.mxu0 %v482_v53  ;;  %v907_v53 = vunpack.c.h.bf16 %v925_v47 }
  0x2c   : > { %581 = vmatprep.subr.mxu0 %v481_v55  ;;  %v924_v55 = vld [vmem:[%s1228_s4 + $0x68] sm:$0xff]  }
  0x2d   : > { %582 = vmatpush1.msra.mxu0 %v480_v56  ;;  %v906_v56 = vunpack.c.l.bf16 %v925_v47 }
  0x2e   : > { %583 = vmatprep.subr.mxu0 %v479_v58  ;;  %v874_v58 = vunpack.c.l.bf16 %v917_v51 }
  0x2f   : > { %584 = vmatpush1.msra.mxu0 %v478_v59  ;;  %v903_v59 = vunpack.c.h.bf16 %v924_v55 }
  0x30   : > { %585 = vmatprep.subr.mxu0 %v541_v61  ;;  %v923_v61 = vld [vmem:[%s1228_s4 + $0x60] sm:$0xff]  }
  0x31   : > { %586 = vmatpush2.msra.mxu0 %v540_v62  ;;  %v902_v62 = vunpack.c.l.bf16 %v924_v55 }
  0x32   : > { %587 = vmatprep.subr.mxu0 %v539_v0  ;;  %v870_v0 = vunpack.c.l.bf16 %v916_v57 }
  0x33   : > { %588 = vmatpush2.msra.mxu0 %v538_v1  ;;  %v899_v1 = vunpack.c.h.bf16 %v923_v61 }
  0x34   : > { %589 = vmatprep.subr.mxu0 %v537_v3  ;;  %v922_v3 = vld [vmem:[%s1228_s4 + $0x58] sm:$0xff]  }
  0x35   : > { %590 = vmatpush2.msra.mxu0 %v536_v4  ;;  %v898_v4 = vunpack.c.l.bf16 %v923_v61 }
  0x36   : > { %591 = vmatprep.subr.mxu0 %v535_v6  ;;  %v866_v6 = vunpack.c.l.bf16 %v915_v63 }
  0x37   : > { %592 = vmatpush2.msra.mxu0 %v534_v7  ;;  %v895_v7 = vunpack.c.h.bf16 %v922_v3 }
  0x38   : > { %593 = vmatprep.subr.mxu0 %v533_v9  ;;  %v921_v9 = vld [vmem:[%s1228_s4 + $0x50] sm:$0xff]  }
  0x39   : > { %594 = vmatpush2.msra.mxu0 %v532_v11  ;;  %v894_v11 = vunpack.c.l.bf16 %v922_v3 }
  0x3a   : > { %595 = vmatprep.subr.mxu0 %v531_v13  ;;  %v862_v13 = vunpack.c.l.bf16 %v914_v5 }
  0x3b   : > { %596 = vmatpush2.msra.mxu0 %v530_v14  ;;  %v891_v14 = vunpack.c.h.bf16 %v921_v9 }
  0x3c   : > { %597 = vmatprep.subr.mxu0 %v529_v16  ;;  %v890_v16 = vunpack.c.l.bf16 %v921_v9 }
  0x3d   : > { %598 = vmatpush2.msra.mxu0 %v528_v17  ;;  %v858_v17 = vunpack.c.l.bf16 %v913_v12 }
  0x3e   : > { %599 = vmatprep.subr.mxu0 %v527_v19  ;;  %v350_v19 = vshrl.u32 %v349_v18, 7 }
  0x3f   : > { %600 = vmatpush2.msra.mxu0 %v526_v20 }
  0x40   : > { %601 = vmatprep.subr.mxu0 %v525_v22  ;;  %v351_v20 = vsub.s32 0, %v350_v19  ;;  %v355_v22 = vsub.s32 1, %v350_v19 }
  0x41   : > { %602 = vmatpush2.msra.mxu0 %v524_v23 }
  0x42   : > { %603 = vmatprep.subr.mxu0 %v523_v25  ;;  %v352_v23 = vrot.slane %v252_v21, %v351_v20  ;;  %v356_v24 = vrot.slane %v252_v21, %v355_v22 }
  0x43   : > { %604 = vmatpush2.msra.mxu0 %v522_v26 }
  0x44   : > { %605 = vmatprep.subr.mxu0 %v521_v28 }
  0x45   : > { %606 = vmatpush2.msra.mxu0 %v520_v29 }
  0x46   : > { %607 = vmatprep.subr.mxu0 %v519_v30 }
  0x47   : > { %608 = vmatpush2.msra.mxu0 %v518_v31 }
  0x48   : > { %609 = vmatprep.subr.mxu0 %v517_v35 }
  0x49   : > { %610 = vmatpush2.msra.mxu0 %v516_v36 }
  0x4a   : > { %611 = vmatprep.subr.mxu0 %v515_v38  ;;  %v887_v38 = vunpack.c.h.bf16 %v920_v37 }
  0x4b   : > { %612 = vmatpush2.msra.mxu0 %v514_v39  ;;  %v912_v39 = vld [vmem:[%s1228_s4 + $0x8] sm:$0xff]  }
  0xd3   : > { %v975_v32 = vpop.f32.mrf.mxu1 }
  0xd5   : > { %v333_v33 = vpop.f32.mrf.mxu1 }
  0xd6   : > { %842 = vmatmul.mubr.msk.f32.vlgmr.msra.gmra.mxu1 %vm260_vm0, %v333_v33 }
  0xd7   : > { %435 = vmatprep.mubr.f32.mxu1 %v993_v10  ;;  %v463_v10 = vld [vmem:[%s1227_s3 + $0x88] sm:$0xff]  ;;  %932 = vmatpush3.msra.mxu1 %v879_v49  ;;  %v546_v49 = vrot.slane %v839_v48, %v351_v20 }
  0xd8   : > { %v513_v40 = vunpack.c.h.bf16 %v463_v10  ;;  %v512_v41 = vunpack.c.l.bf16 %v463_v10  ;;  %933 = vmatprep.subr.mxu1 %v910_v50  ;;  %v855_v10 = vunpack.c.h.bf16 %v912_v39  ;;  %v550_v50 = vrot.slane %v839_v48, %v355_v22 }
  0xd9   : > { %934 = vmatpush3.msra.mxu1 %v878_v52 }
  0xda   : > { %843 = vmatmul.mubr.msk.f32.gmra.mxu1 %vm260_vm0, %v975_v32  ;;  %613 = vmatprep.subr.mxu0 %v513_v40  ;;  %v886_v40 = vunpack.c.l.bf16 %v920_v37 }
  0xdb   : > { %614 = vmatpush2.msra.mxu0 %v512_v41  ;;  %935 = vmatprep.subr.mxu1 %v907_v53  ;;  %v854_v41 = vunpack.c.l.bf16 %v912_v39 }
  0xdc   : > { %615 = vmatprep.subr.mxu0 %v511_v43  ;;  %936 = vmatpush3.msra.mxu1 %v875_v54  ;;  %v883_v43 = vunpack.c.h.bf16 %v919_v42 }
  0xdd   : > { %616 = vmatpush2.msra.mxu0 %v510_v44  ;;  %937 = vmatprep.subr.mxu1 %v906_v56  ;;  %v849_v44 = vld [vmem:[%s1228_s4] sm:$0xff]  }
  0xde   : > { %938 = vmatpush3.msra.mxu1 %v874_v58  ;;  %v851_v45 = vunpack.c.h.bf16 %v849_v44  ;;  %v850_v47 = vunpack.c.l.bf16 %v849_v44 }
  0xdf   : > { %939 = vmatprep.subr.mxu1 %v903_v59 }
  0xe0   : > { %940 = vmatpush3.msra.mxu1 %v871_v60 }
  0xe1   : > { %941 = vmatprep.subr.mxu1 %v902_v62 }
  0xe2   : > { %942 = vmatpush3.msra.mxu1 %v870_v0  ;;  %v255_v0 = vld [vmem:[%s1229_s5 + $0x2] ss:$0 sm:$0xff] }
  0xe3   : > { %943 = vmatprep.subr.mxu1 %v899_v1 }
  0xe4   : > { %944 = vmatpush3.msra.mxu1 %v867_v2 }
  0xe5   : > { %945 = vmatprep.subr.mxu1 %v898_v4 }
  0xe6   : > { %946 = vmatpush3.msra.mxu1 %v866_v6 }
  0xe7   : > { %947 = vmatprep.subr.mxu1 %v895_v7 }
  0xe8   : > { %948 = vmatpush3.msra.mxu1 %v863_v8 }
  0xe9   : > { %949 = vmatprep.subr.mxu1 %v894_v11 }
  0xea   : > { %950 = vmatpush3.msra.mxu1 %v862_v13 }
  0xeb   : > { %951 = vmatprep.subr.mxu1 %v891_v14 }
  0xec   : > { %952 = vmatpush3.msra.mxu1 %v859_v15 }
  0xed   : > { %953 = vmatprep.subr.mxu1 %v890_v16 }
  0xee   : > { %954 = vmatpush3.msra.mxu1 %v858_v17 }
  0xef   : > { %955 = vmatprep.subr.mxu1 %v887_v38 }
  0xf0   : > { %956 = vmatpush3.msra.mxu1 %v855_v10 }
  0xf1   : > { %957 = vmatprep.subr.mxu1 %v886_v40 }
  0xf2   : > { %958 = vmatpush3.msra.mxu1 %v854_v41 }
  0xf3   : > { %959 = vmatprep.subr.mxu1 %v883_v43 }
  0xf4   : > { %960 = vmatpush3.msra.mxu1 %v851_v45 }
  0xf5   : > { %961 = vmatprep.subr.mxu1 %v882_v46 }
  0xf6   : > { %962 = vmatpush3.msra.mxu1 %v850_v47 }
 0x196   : > { %v431_v25 = vpop.f32.mrf.mxu1 }
 0x197   : > { %v432_v26 = vadd.f32 %v431_v25, %v352_v23 }
 0x198   : > { %v433_v27 = vpop.f32.mrf.mxu1 }
 0x199   : > { %v434_v28 = vadd.f32 %v433_v27, %v356_v24  ;;  %v442_v31 = vmax.f32 %v432_v26, 0.0 }
 0x19a   : > { %v437_v29 = vpop.f32.mrf.mxu1 }
 0x19b   : > { %v443_v30 = vmax.f32 %v434_v28, 0.0  ;;  %v438_v32 = vadd.f32 %v437_v29, %v352_v23 }
 0x19c   : > { %v439_v33 = vpop.f32.mrf.mxu1 }
 0x19d   : > { %v440_v34 = vadd.f32 %v439_v33, %v356_v24  ;;  %617 = vmatprep.mubr.f32.mxu0 %v443_v30  ;;  %v444_v36 = vmax.f32 %v438_v32, 0.0 }
 0x19e   : > { %618 = vmatmul.mubr.f32.vlgmr.msra.gmra.mxu0 %v442_v31 }
 0x19f   : > { %v445_v35 = vmax.f32 %v440_v34, 0.0 }
 0x1a1   : > { %623 = vmatprep.mubr.f32.mxu0 %v445_v35 }
 0x1a2   : > { %624 = vmatmul.mubr.f32.gmra.mxu0 %v444_v36 }
 0x25e   : > { %v619_v51 = vpop.f32.mrf.mxu0 }
 0x25f   : > { %v620_v52 = vadd.f32 %v619_v51, %v546_v49 }
 0x260   : > { %v621_v53 = vpop.f32.mrf.mxu0 }
 0x261   : > { %v622_v54 = vadd.f32 %v621_v53, %v550_v50  ;;  %v630_v57 = vmax.f32 %v620_v52, 0.0 }
 0x262   : > { %v625_v55 = vpop.f32.mrf.mxu0 }
 0x263   : > { %v631_v56 = vmax.f32 %v622_v54, 0.0  ;;  %v626_v58 = vadd.f32 %v625_v55, %v546_v49 }
 0x264   : > { %v627_v59 = vpop.f32.mrf.mxu0 }
 0x265   : > { %v628_v60 = vadd.f32 %v627_v59, %v550_v50  ;;  %762 = vmatprep.mubr.f32.mxu1 %v631_v56  ;;  %v632_v62 = vmax.f32 %v626_v58, 0.0 }
 0x266   : > { %763 = vmatmul.mubr.f32.vlgmr.msra.gmra.mxu1 %v630_v57 }
 0x267   : > { %v633_v61 = vmax.f32 %v628_v60, 0.0 }
 0x269   : > { %767 = vmatprep.mubr.f32.mxu1 %v633_v61 }
 0x26a   : > { %768 = vmatmul.mubr.f32.gmra.mxu1 %v632_v62 }
 0x326   : > { %v963_v63 = vpop.f32.mrf.mxu1 }
 0x328   : > { %v964_v1 = vpop.f32.mrf.mxu1 }
 0x329   : > { %v965_v2 = vadd.f32 %v964_v1, %v963_v63 }
 0x32a   : > { %v966_v3 = vpop.f32.mrf.mxu1 }
 0x32b   : > { %v765_v4 = vadd.f32 %v965_v2, %v255_v0 }
 0x32c   : > { %v967_v5 = vpop.f32.mrf.mxu1 }
 0x32d   : > { %773 = vst [vmem:[%s251_s10] sm:$0xff] %v765_v4  ;;  %v968_v6 = vadd.f32 %v967_v5, %v966_v3 }
 0x32f   : > { %v770_v7 = vadd.f32 %v968_v6, %v255_v0 }
 0x331   : > { %774 = vst [vmem:[%s251_s10 + $0x8] sm:$0xff] %v770_v7 }
 0x332 PF: > { %s16_s21 = sadd.s32 1, %s991_s21  }
 0x333   : > { %p13_p4 = scmp.ge.s32.totalorder %s16_s21, 10  }
 0x335   :  { %15 = sbr.rel (!%p13_p4) target bundleno = 1 (0x1), region = 75 }

</bundles_post_ra>
